<compile_context>
chip_gen: v5e
topology: v5e:2x2
jax: 0.10.0
libtpu: 0.0.40
codegen_flags: <defaults>
</compile_context>

<pallas_src>
import numpy as np

import jax
import jax.numpy as jnp
from jax import lax
from jax.experimental import pallas as pl
from jax.experimental.pallas import tpu as pltpu

PAD_CODE = -1        # code for padded (absent) query slots; also the "miss" index
VOCAB_GAP_CODE = -2  # code for class indices with no (winning) name (never matches)

LANES = 128          # vreg lane width; output last dim stays a multiple of 128
MAX_TILE_ROWS = 512  # up to (512, 128) int32 = 256 KiB per block per array
ROW_CHUNK = 64       # register-resident inner chunk: 8 vregs names + 8 vregs idx
MIN_BUCKET = 1024    # minimum padded query count (one (8,128) slab)


def _name_code(name) -> int:
    """Deterministic, in-script polynomial hash of a name -> positive int32."""
    s = str(name)
    h = 0
    for ch in s:
        h = (h * 131 + ord(ch)) % 2147483647
    return int(h) if h != 0 else 1  # strictly positive (pad=-1, gap=-2 are reserved)


def _bucket_size(total: int) -> int:
    """Pad total query count to a power-of-two bucket >= MIN_BUCKET (few retraces)."""
    total = max(total, 1)
    return max(MIN_BUCKET, 1 << (total - 1).bit_length())


def _lookup_kernel(vocab_ref, names_ref, out_ref):
    # vocab_ref : (V,)   int32, scalar-prefetched into SMEM
    # names_ref : (T,128) int32 VMEM tile of query codes
    # out_ref   : (T,128) int32 VMEM tile of class indices (-1 = pad / miss)
    num_classes = vocab_ref.shape[0]
    tile_rows = names_ref.shape[0]
    chunk = min(ROW_CHUNK, tile_rows)          # both are powers of two -> divides
    n_chunks = tile_rows // chunk
    unroll = True if num_classes <= 32 else 8  # capped unroll: LLO visibility w/o code bloat

    def process_chunk(r0):
        # Load a register-resident chunk once; the vocab scan never re-streams VMEM.
        names = names_ref[pl.ds(r0, chunk), :]
        ones = jnp.ones(names.shape, dtype=jnp.int32)     # hoisted splat
        idx0 = jnp.full_like(names, PAD_CODE)
        v0 = jnp.zeros(names.shape, dtype=jnp.int32)       # loop-carried index vreg

        def body(v, carry):
            idx, v_vec = carry
            code = vocab_ref[v]                             # one scalar->vector splat/iter
            idx = jnp.where(names == code, v_vec, idx)      # pure VPU compare + select
            return (idx, v_vec + ones)                      # VALU add, no second splat

        idx, _ = lax.fori_loop(0, num_classes, body, (idx0, v0), unroll=unroll)
        out_ref[pl.ds(r0, chunk), :] = idx

    if n_chunks == 1:
        process_chunk(0)
    else:
        @pl.loop(0, n_chunks)
        def _(c):
            process_chunk(pl.multiple_of(c * chunk, chunk))


@jax.jit
def _lookup(names_codes_2d: jax.Array, vocab_codes: jax.Array) -> jax.Array:
    """names_codes_2d: (rows, 128) int32; vocab_codes: (V,) int32 -> (rows, 128) int32."""
    rows, lanes = names_codes_2d.shape
    # rows is a power of two >= 8.  Guarantee >= 2 grid steps when possible so
    # ("parallel",) shards across both TensorCores on v7x; keep blocks <= 256 KiB.
    if rows >= 16:
        tile_rows = min(MAX_TILE_ROWS, max(8, rows // 2))
    else:
        tile_rows = rows
    grid = (rows // tile_rows,)
    return pl.pallas_call(
        _lookup_kernel,
        out_shape=jax.ShapeDtypeStruct((rows, lanes), jnp.int32),
        grid_spec=pltpu.PrefetchScalarGridSpec(
            num_scalar_prefetch=1,                # vocab_codes -> SMEM
            grid=grid,
            in_specs=[pl.BlockSpec((tile_rows, lanes), lambda i, vocab: (i, 0))],
            out_specs=pl.BlockSpec((tile_rows, lanes), lambda i, vocab: (i, 0)),
        ),
        compiler_params=pltpu.CompilerParams(
            dimension_semantics=("parallel",),    # shard query tiles across TCs (v7x)
        ),
    )(vocab_codes, names_codes_2d)


class MultinamesToIndices:
    """JAX/Pallas re-implementation of torchwrench MultinamesToIndices.

    forward(names: List[List[name]]) -> List[List[int]] (inverse lookup of idx_to_name).
    Names absent from the vocabulary map to -1 (callers cannot distinguish a
    miss from padding; padding never escapes this API).
    """

    def __init__(self, idx_to_name):
        self.idx_to_name = dict(idx_to_name)
        # Dict-inversion semantics: for duplicate names, insertion-order last wins.
        name_to_idx = {name: i for i, name in self.idx_to_name.items()}
        num_classes = (max(self.idx_to_name.keys()) + 1) if self.idx_to_name else 0
        codes = [VOCAB_GAP_CODE] * max(num_classes, 1)     # keep V >= 1 for the kernel
        for name, i in name_to_idx.items():                # only the winning index gets a code
            codes[i] = _name_code(name)
        used = [c for c in codes if c != VOCAB_GAP_CODE]
        # TODO(synk): query-vs-vocab hash collisions remain possible by construction;
        # vocab-internal collisions are rejected here.
        assert len(used) == len(set(used)), "hash collision between vocabulary names"
        self.vocab_codes = jnp.asarray(codes, dtype=jnp.int32)
        self._code_cache = {}

    def _code(self, name) -> int:
        c = self._code_cache.get(name)
        if c is None:
            c = _name_code(name)
            self._code_cache[name] = c
        return c

    def forward(self, names):
        flat_codes = [self._code(n) for row in names for n in row]
        total = len(flat_codes)
        if total == 0:
            return [[] for _ in names]

        n_pad = _bucket_size(total)
        slab = np.full(n_pad, PAD_CODE, dtype=np.int32)    # preallocated, vectorized fill
        slab[:total] = np.asarray(flat_codes, dtype=np.int32)
        names_codes = jnp.asarray(slab).reshape(n_pad // LANES, LANES)

        idx = _lookup(names_codes, self.vocab_codes)
        # Bucket padding bounds D2H overfetch to <= 2x the real query count.
        idx_host = jax.device_get(idx).reshape(-1)[:total]  # device_get synchronizes

        out, pos = [], 0
        for row in names:
            out.append([int(i) for i in idx_host[pos:pos + len(row)]])
            pos += len(row)
        return out

    __call__ = forward


if __name__ == "__main__":
    # deterministic setup (no checkpoints, no files)
    key = jax.random.PRNGKey(0)  # reproducible vocabulary ordering
    base_names = ["cat", "dog", "bird", "fish", "horse", "frog", "deer", "truck",
                  "ship", "plane", "car", "bike", "tree", "rock", "star", "moon"]
    perm = jax.random.permutation(key, len(base_names))
    idx_to_name = {i: base_names[int(p)] for i, p in enumerate(perm)}
    name_to_idx_ref = {v: k for k, v in idx_to_name.items()}

    module = MultinamesToIndices(idx_to_name)

    names = [
        ["cat", "dog", "moon"],
        ["ship"],
        ["frog", "star", "bike", "tree", "rock"],
        [],
    ]

    # run the kernel once directly and block on the result
    flat = [_name_code(n) for row in names for n in row]
    n_pad = _bucket_size(len(flat))
    slab = np.full(n_pad, PAD_CODE, dtype=np.int32)
    slab[:len(flat)] = np.asarray(flat, dtype=np.int32)
    slab = jnp.asarray(slab).reshape(n_pad // LANES, LANES)
    _ = jax.block_until_ready(_lookup(slab, module.vocab_codes))

    # full module path + verification against a pure-Python reference
    indices = module(names)
    expected = [[name_to_idx_ref[n] for n in row] for row in names]
    assert indices == expected, (indices, expected)

    # extra check: unknown names and a larger (multi-grid-step) batch
    big = [["cat", "unknown_thing", "moon", "dog"] * 64 for _ in range(12)]
    got = module(big)
    want = [[name_to_idx_ref.get(n, -1) for n in row] for row in big]
    assert got == want

    print("KERNEL_OK")
</pallas_src>

<mosaic_0001>
module attributes {stable_mosaic.version = 11 : i64} {
  func.func @_lookup_kernel(%arg0: i32, %arg1: memref<16xi32, #tpu.memory_space<smem>>, %arg2: memref<8x128xi32, #tpu.memory_space<vmem>>, %arg3: memref<8x128xi32, #tpu.memory_space<vmem>>) attributes {dimension_semantics = [#tpu.dimension_semantics<parallel>], iteration_bounds = array<i64: 1>, scalar_prefetch = 1 : i64, scratch_operands = 0 : i64, tpu.core_type = #tpu.core_type<tc>, window_params = [{transform_indices = @transform_0, window_bounds = array<i64: 8, 128>}, {transform_indices = @transform_1, window_bounds = array<i64: 8, 128>}]} {
    %c0 = arith.constant 0 : index
    %c0_0 = arith.constant 0 : index
    %0 = vector.load %arg2[%c0, %c0_0] : memref<8x128xi32, #tpu.memory_space<vmem>>, vector<8x128xi32>
    %c1_i32 = arith.constant 1 : i32
    %1 = vector.broadcast %c1_i32 : i32 to vector<8x128xi32>
    %c-1_i32 = arith.constant -1 : i32
    %2 = vector.broadcast %c-1_i32 : i32 to vector<8x128xi32>
    %c0_i32 = arith.constant 0 : i32
    %3 = vector.broadcast %c0_i32 : i32 to vector<8x128xi32>
    %c0_i32_1 = arith.constant 0 : i32
    %4 = arith.index_cast %c0_i32_1 : i32 to index
    %5 = memref.load %arg1[%4] : memref<16xi32, #tpu.memory_space<smem>>
    %6 = vector.broadcast %5 : i32 to vector<8x128xi32>
    %7 = arith.cmpi eq, %0, %6 : vector<8x128xi32>
    %8 = arith.select %7, %3, %2 : vector<8x128xi1>, vector<8x128xi32>
    %9 = arith.addi %3, %1 : vector<8x128xi32>
    %c1_i32_2 = arith.constant 1 : i32
    %10 = arith.index_cast %c1_i32_2 : i32 to index
    %11 = memref.load %arg1[%10] : memref<16xi32, #tpu.memory_space<smem>>
    %12 = vector.broadcast %11 : i32 to vector<8x128xi32>
    %13 = arith.cmpi eq, %0, %12 : vector<8x128xi32>
    %14 = arith.select %13, %9, %8 : vector<8x128xi1>, vector<8x128xi32>
    %15 = arith.addi %9, %1 : vector<8x128xi32>
    %c2_i32 = arith.constant 2 : i32
    %16 = arith.index_cast %c2_i32 : i32 to index
    %17 = memref.load %arg1[%16] : memref<16xi32, #tpu.memory_space<smem>>
    %18 = vector.broadcast %17 : i32 to vector<8x128xi32>
    %19 = arith.cmpi eq, %0, %18 : vector<8x128xi32>
    %20 = arith.select %19, %15, %14 : vector<8x128xi1>, vector<8x128xi32>
    %21 = arith.addi %15, %1 : vector<8x128xi32>
    %c3_i32 = arith.constant 3 : i32
    %22 = arith.index_cast %c3_i32 : i32 to index
    %23 = memref.load %arg1[%22] : memref<16xi32, #tpu.memory_space<smem>>
    %24 = vector.broadcast %23 : i32 to vector<8x128xi32>
    %25 = arith.cmpi eq, %0, %24 : vector<8x128xi32>
    %26 = arith.select %25, %21, %20 : vector<8x128xi1>, vector<8x128xi32>
    %27 = arith.addi %21, %1 : vector<8x128xi32>
    %c4_i32 = arith.constant 4 : i32
    %28 = arith.index_cast %c4_i32 : i32 to index
    %29 = memref.load %arg1[%28] : memref<16xi32, #tpu.memory_space<smem>>
    %30 = vector.broadcast %29 : i32 to vector<8x128xi32>
    %31 = arith.cmpi eq, %0, %30 : vector<8x128xi32>
    %32 = arith.select %31, %27, %26 : vector<8x128xi1>, vector<8x128xi32>
    %33 = arith.addi %27, %1 : vector<8x128xi32>
    %c5_i32 = arith.constant 5 : i32
    %34 = arith.index_cast %c5_i32 : i32 to index
    %35 = memref.load %arg1[%34] : memref<16xi32, #tpu.memory_space<smem>>
    %36 = vector.broadcast %35 : i32 to vector<8x128xi32>
    %37 = arith.cmpi eq, %0, %36 : vector<8x128xi32>
    %38 = arith.select %37, %33, %32 : vector<8x128xi1>, vector<8x128xi32>
    %39 = arith.addi %33, %1 : vector<8x128xi32>
    %c6_i32 = arith.constant 6 : i32
    %40 = arith.index_cast %c6_i32 : i32 to index
    %41 = memref.load %arg1[%40] : memref<16xi32, #tpu.memory_space<smem>>
    %42 = vector.broadcast %41 : i32 to vector<8x128xi32>
    %43 = arith.cmpi eq, %0, %42 : vector<8x128xi32>
    %44 = arith.select %43, %39, %38 : vector<8x128xi1>, vector<8x128xi32>
    %45 = arith.addi %39, %1 : vector<8x128xi32>
    %c7_i32 = arith.constant 7 : i32
    %46 = arith.index_cast %c7_i32 : i32 to index
    %47 = memref.load %arg1[%46] : memref<16xi32, #tpu.memory_space<smem>>
    %48 = vector.broadcast %47 : i32 to vector<8x128xi32>
    %49 = arith.cmpi eq, %0, %48 : vector<8x128xi32>
    %50 = arith.select %49, %45, %44 : vector<8x128xi1>, vector<8x128xi32>
    %51 = arith.addi %45, %1 : vector<8x128xi32>
    %c8_i32 = arith.constant 8 : i32
    %52 = arith.index_cast %c8_i32 : i32 to index
    %53 = memref.load %arg1[%52] : memref<16xi32, #tpu.memory_space<smem>>
    %54 = vector.broadcast %53 : i32 to vector<8x128xi32>
    %55 = arith.cmpi eq, %0, %54 : vector<8x128xi32>
    %56 = arith.select %55, %51, %50 : vector<8x128xi1>, vector<8x128xi32>
    %57 = arith.addi %51, %1 : vector<8x128xi32>
    %c9_i32 = arith.constant 9 : i32
    %58 = arith.index_cast %c9_i32 : i32 to index
    %59 = memref.load %arg1[%58] : memref<16xi32, #tpu.memory_space<smem>>
    %60 = vector.broadcast %59 : i32 to vector<8x128xi32>
    %61 = arith.cmpi eq, %0, %60 : vector<8x128xi32>
    %62 = arith.select %61, %57, %56 : vector<8x128xi1>, vector<8x128xi32>
    %63 = arith.addi %57, %1 : vector<8x128xi32>
    %c10_i32 = arith.constant 10 : i32
    %64 = arith.index_cast %c10_i32 : i32 to index
    %65 = memref.load %arg1[%64] : memref<16xi32, #tpu.memory_space<smem>>
    %66 = vector.broadcast %65 : i32 to vector<8x128xi32>
    %67 = arith.cmpi eq, %0, %66 : vector<8x128xi32>
    %68 = arith.select %67, %63, %62 : vector<8x128xi1>, vector<8x128xi32>
    %69 = arith.addi %63, %1 : vector<8x128xi32>
    %c11_i32 = arith.constant 11 : i32
    %70 = arith.index_cast %c11_i32 : i32 to index
    %71 = memref.load %arg1[%70] : memref<16xi32, #tpu.memory_space<smem>>
    %72 = vector.broadcast %71 : i32 to vector<8x128xi32>
    %73 = arith.cmpi eq, %0, %72 : vector<8x128xi32>
    %74 = arith.select %73, %69, %68 : vector<8x128xi1>, vector<8x128xi32>
    %75 = arith.addi %69, %1 : vector<8x128xi32>
    %c12_i32 = arith.constant 12 : i32
    %76 = arith.index_cast %c12_i32 : i32 to index
    %77 = memref.load %arg1[%76] : memref<16xi32, #tpu.memory_space<smem>>
    %78 = vector.broadcast %77 : i32 to vector<8x128xi32>
    %79 = arith.cmpi eq, %0, %78 : vector<8x128xi32>
    %80 = arith.select %79, %75, %74 : vector<8x128xi1>, vector<8x128xi32>
    %81 = arith.addi %75, %1 : vector<8x128xi32>
    %c13_i32 = arith.constant 13 : i32
    %82 = arith.index_cast %c13_i32 : i32 to index
    %83 = memref.load %arg1[%82] : memref<16xi32, #tpu.memory_space<smem>>
    %84 = vector.broadcast %83 : i32 to vector<8x128xi32>
    %85 = arith.cmpi eq, %0, %84 : vector<8x128xi32>
    %86 = arith.select %85, %81, %80 : vector<8x128xi1>, vector<8x128xi32>
    %87 = arith.addi %81, %1 : vector<8x128xi32>
    %c14_i32 = arith.constant 14 : i32
    %88 = arith.index_cast %c14_i32 : i32 to index
    %89 = memref.load %arg1[%88] : memref<16xi32, #tpu.memory_space<smem>>
    %90 = vector.broadcast %89 : i32 to vector<8x128xi32>
    %91 = arith.cmpi eq, %0, %90 : vector<8x128xi32>
    %92 = arith.select %91, %87, %86 : vector<8x128xi1>, vector<8x128xi32>
    %93 = arith.addi %87, %1 : vector<8x128xi32>
    %c15_i32 = arith.constant 15 : i32
    %94 = arith.index_cast %c15_i32 : i32 to index
    %95 = memref.load %arg1[%94] : memref<16xi32, #tpu.memory_space<smem>>
    %96 = vector.broadcast %95 : i32 to vector<8x128xi32>
    %97 = arith.cmpi eq, %0, %96 : vector<8x128xi32>
    %98 = arith.select %97, %93, %92 : vector<8x128xi1>, vector<8x128xi32>
    %99 = arith.addi %93, %1 : vector<8x128xi32>
    %c16_i32 = arith.constant 16 : i32
    %c0_3 = arith.constant 0 : index
    %c0_4 = arith.constant 0 : index
    %100 = vector.load %arg3[%c0_3, %c0_4] : memref<8x128xi32, #tpu.memory_space<vmem>>, vector<8x128xi32>
    tpu.vector_store %arg3[%c0_3, %c0_4], %98 {strides = array<i32>} : memref<8x128xi32, #tpu.memory_space<vmem>>, vector<8x128xi32>,
    return
  }
  func.func @transform_0(%arg0: i32, %arg1: memref<16xi32, #tpu.memory_space<smem>>) -> (i32, i32) {
    %c0_i32 = arith.constant 0 : i32
    %c0_i32_0 = arith.constant 0 : i32
    return %arg0, %c0_i32 : i32, i32
  }
  func.func @transform_1(%arg0: i32, %arg1: memref<16xi32, #tpu.memory_space<smem>>) -> (i32, i32) {
    %c0_i32 = arith.constant 0 : i32
    %c0_i32_0 = arith.constant 0 : i32
    return %arg0, %c0_i32 : i32, i32
  }
}

</mosaic_0001>

<bundles_post_ra>
// kernel: _lookup.1
= control target key start
LH: loop header
LB: loop body
LE: loop exit
PB: predicated region body
PF: predicated region fallthrough
CT: control target
= control target key end

     0   :  { %s200_s12 = smov [#allocation3]   ;;  %s228_s0 = inlined_call_operand.hbm [shape: s32[16], index: 0, kind: input, shape index: {}]   ;;  %s229_s1 = inlined_call_operand.hbm [shape: s32[8,128], index: 1, kind: input, shape index: {}]   ;;  %s230_s2 = inlined_call_operand.hbm [shape: s32[8,128], index: 2, kind: output, shape index: {}]  }
   0x1   :  { %s8_s11 = sshll.u32 %s228_s0, 4  ;;  %s9_s11 = int_to_ptr.hbm [resolvable:$true] %s8_s11 }
   0x2   :  { %11 = dma.hbm_to_smem %s9_s11, 16, %s200_s12, [#allocation2] }
   0x3   :  { %194 = dma.done.wait [#allocation2], 16 }
   0x4   :  { %195 = vsyncadd [#allocation2], 4294967280 }
   0x5   :  { %14 = sfence }
   0x6   :  { %15 = vsyncpa [#allocation5], 0 }
   0x7   :  { %16 = vsyncpa [#allocation6], 0  ;;  %s22_s15 = sshll.u32 %s229_s1, 4  ;;  %s201_s16 = smov [#allocation4]   ;;  %s23_s15 = int_to_ptr.hbm [resolvable:$true] %s22_s15 }
   0x8   :  { %s24_s17 = sshll.u32 %s201_s16, 4  ;;  %s25_s17 = int_to_ptr.vmem [resolvable:$true] %s24_s17 }
   0x9   :  { %27 = dma.hbm_to_vmem [thread:$0]  %s23_s15, 128, %s25_s17, [#allocation5]  }
   0xa   :  { %196 = dma.done.wait [#allocation5], 128  }
   0xb   :  { %197 = vsyncadd [#allocation5], 4294967168  ;;  %s33_s0 = sld [smem:[#allocation3]]  ;;  %v32_v0 = vld [vmem:[#allocation4] sm:$0xff]  ;;  %v202_v3 = vmov 4294967295   ;;  %s203_s4 = smov [#allocation7]  }
   0xc   :  { %s115_s18 = sld [smem:[#allocation3 + $0x1]]  ;;  %s103_s5 = sshll.u32 %s203_s4, 4  ;;  %s104_s5 = int_to_ptr.vmem [resolvable:$true] %s103_s5 }
   0xd   :  { %s116_s19 = sld [smem:[#allocation3 + $0x2]]  ;;  %s105_s8 = sshll.u32 %s230_s2, 4  ;;  %s106_s8 = int_to_ptr.hbm [resolvable:$true] %s105_s8 }
   0xe   :  { %s117_s20 = sld [smem:[#allocation3 + $0x3]] }
   0xf   :  { %s118_s21 = sld [smem:[#allocation3 + $0x4]] }
  0x10   :  { %s119_s22 = sld [smem:[#allocation3 + $0x5]] }
  0x11   :  { %v34_v1 = vstv %s33_s0  ;;  %s120_s23 = sld [smem:[#allocation3 + $0x6]] }
  0x12   :  { %vm35_vm0 = vcmp.eq.s32.totalorder %v32_v0, %v34_v1  ;;  %v38_v2 = vstv %s115_s18  ;;  %s121_s24 = sld [smem:[#allocation3 + $0x7]] }
  0x13   :  { %v36_v4 = vsel %vm35_vm0, 0, %v202_v3  ;;  %vm39_vm1 = vcmp.eq.s32.totalorder %v32_v0, %v38_v2  ;;  %v42_v5 = vstv %s116_s19  ;;  %s122_s1 = sld [smem:[#allocation3 + $0x8]] }
  0x14   :  { %v40_v6 = vsel %vm39_vm1, 1, %v36_v4  ;;  %vm43_vm2 = vcmp.eq.s32.totalorder %v32_v0, %v42_v5  ;;  %v46_v7 = vstv %s117_s20  ;;  %s123_s25 = sld [smem:[#allocation3 + $0x9]] }
  0x15   :  { %v44_v8 = vsel %vm43_vm2, 2, %v40_v6  ;;  %vm47_vm3 = vcmp.eq.s32.totalorder %v32_v0, %v46_v7  ;;  %v50_v9 = vstv %s118_s21  ;;  %s124_s26 = sld [smem:[#allocation3 + $0xa]] }
  0x16   :  { %v48_v10 = vsel %vm47_vm3, 3, %v44_v8  ;;  %vm51_vm4 = vcmp.eq.s32.totalorder %v32_v0, %v50_v9  ;;  %v54_v11 = vstv %s119_s22  ;;  %s125_s27 = sld [smem:[#allocation3 + $0xb]] }
  0x17   :  { %v52_v12 = vsel %vm51_vm4, 4, %v48_v10  ;;  %vm55_vm5 = vcmp.eq.s32.totalorder %v32_v0, %v54_v11  ;;  %v58_v13 = vstv %s120_s23  ;;  %s126_s28 = sld [smem:[#allocation3 + $0xc]] }
  0x18   :  { %v56_v14 = vsel %vm55_vm5, 5, %v52_v12  ;;  %vm59_vm6 = vcmp.eq.s32.totalorder %v32_v0, %v58_v13  ;;  %v62_v15 = vstv %s121_s24  ;;  %s127_s29 = sld [smem:[#allocation3 + $0xd]] }
  0x19   :  { %v60_v16 = vsel %vm59_vm6, 6, %v56_v14  ;;  %vm63_vm7 = vcmp.eq.s32.totalorder %v32_v0, %v62_v15  ;;  %v66_v17 = vstv %s122_s1  ;;  %s128_s30 = sld [smem:[#allocation3 + $0xe]] }
  0x1a   :  { %v64_v18 = vsel %vm63_vm7, 7, %v60_v16  ;;  %vm67_vm8 = vcmp.eq.s32.totalorder %v32_v0, %v66_v17  ;;  %v70_v19 = vstv %s123_s25  ;;  %s129_s3 = sld [smem:[#allocation3 + $0xf]] }
  0x1b   :  { %v68_v20 = vsel %vm67_vm8, 8, %v64_v18  ;;  %vm71_vm9 = vcmp.eq.s32.totalorder %v32_v0, %v70_v19  ;;  %v74_v21 = vstv %s124_s26 }
  0x1c   :  { %v72_v22 = vsel %vm71_vm9, 9, %v68_v20  ;;  %vm75_vm10 = vcmp.eq.s32.totalorder %v32_v0, %v74_v21  ;;  %v78_v23 = vstv %s125_s27 }
  0x1d   :  { %v76_v24 = vsel %vm75_vm10, 10, %v72_v22  ;;  %vm79_vm11 = vcmp.eq.s32.totalorder %v32_v0, %v78_v23  ;;  %v82_v25 = vstv %s126_s28 }
  0x1e   :  { %v80_v26 = vsel %vm79_vm11, 11, %v76_v24  ;;  %vm83_vm12 = vcmp.eq.s32.totalorder %v32_v0, %v82_v25  ;;  %v86_v27 = vstv %s127_s29 }
  0x1f   :  { %v84_v28 = vsel %vm83_vm12, 12, %v80_v26  ;;  %vm87_vm13 = vcmp.eq.s32.totalorder %v32_v0, %v86_v27  ;;  %v90_v29 = vstv %s128_s30 }
  0x20   :  { %v88_v30 = vsel %vm87_vm13, 13, %v84_v28  ;;  %vm91_vm14 = vcmp.eq.s32.totalorder %v32_v0, %v90_v29  ;;  %v94_v31 = vstv %s129_s3 }
  0x21   :  { %v92_v32 = vsel %vm91_vm14, 14, %v88_v30  ;;  %vm95_vm15 = vcmp.eq.s32.totalorder %v32_v0, %v94_v31 }
  0x22   :  { %v96_v33 = vsel %vm95_vm15, 15, %v92_v32 }
  0x23   :  { %97 = vst [vmem:[#allocation7] sm:$0xff] %v96_v33 }
  0x24   :  { %108 = dma.vmem_to_hbm [thread:$0]  %s104_s5, 128, %s106_s8, [#allocation6]  }
  0x25   :  { %198 = dma.done.wait [#allocation6], 128  }
  0x26   :  { %199 = vsyncadd [#allocation6], 4294967168 }
  0x27   :  { %113 = vsyncpa [#allocation5], 1 }
  0x28   :  { %114 = vsyncpa [#allocation6], 1 }

</bundles_post_ra>
